<compile_context>
chip_gen: v7x
topology: tpu7x:2x2x1
jax: 0.10.0
libtpu: 0.0.40
codegen_flags: <defaults>
</compile_context>

<pallas_src>
import functools

import jax
import jax.numpy as jnp
from jax.experimental import pallas as pl
from jax.experimental.pallas import tpu as pltpu


def _focal_loss_kernel(logits_ref, targets_ref, out_ref, *, alpha, gamma, tile_n, n_valid):
    # logits_ref: (TILE_N, C) in VMEM (input dtype); targets_ref: (TILE_N, 1) i32;
    # out_ref: (TILE_N, 1) f32 per-row focal loss (0 for padded rows).
    logits = logits_ref[...].astype(jnp.float32)                      # (T, C)
    targets = targets_ref[...]                                        # (T, 1) int32

    # Numerically stable per-row logsumexp; reuse `shifted` for the target gather.
    row_max = jnp.max(logits, axis=-1, keepdims=True)                 # (T, 1)
    shifted = logits - row_max                                        # (T, C)
    sum_exp = jnp.sum(jnp.exp(shifted), axis=-1, keepdims=True)       # (T, 1)

    # Gather shifted logit at the target class via iota/one-hot (no dynamic gather on TPU).
    col_idx = jax.lax.broadcasted_iota(jnp.int32, shifted.shape, 1)   # (T, C)
    tgt_shift = jnp.sum(jnp.where(col_idx == targets, shifted, 0.0),
                        axis=-1, keepdims=True)                       # (T, 1)

    ce = jnp.log(sum_exp) - tgt_shift                                 # per-sample CE, (T, 1)
    pt = jnp.exp(-ce)                                                 # prob of the true class
    x = jnp.maximum(1.0 - pt, 0.0)                                    # clamp tiny negatives

    # (1 - pt) ** gamma, specialized for common gammas (compile-time Python branch).
    if gamma == 1.5:
        pow_term = x * jnp.sqrt(x)                                    # exact, no EUP log/exp
    elif gamma == 2.0:
        pow_term = x * x
    elif gamma == 1.0:
        pow_term = x
    else:
        pow_term = jnp.where(x > 0.0,
                             jnp.exp(gamma * jnp.log(jnp.maximum(x, 1e-30))),
                             0.0)

    focal = alpha * pow_term * ce                                     # (T, 1)

    # Zero out rows that are padding (global row index >= n_valid).
    row_ids = (pl.program_id(0) * tile_n
               + jax.lax.broadcasted_iota(jnp.int32, (tile_n, 1), 0))
    focal = jnp.where(row_ids < n_valid, focal, 0.0)

    out_ref[...] = focal


def focal_loss(logits, targets, alpha=0.5, gamma=1.5):
    """logits: (N, C) float (any float dtype); targets: (N,) int class indices.

    Returns scalar mean focal loss. Matches F.cross_entropy(reduction='none') +
    focal weighting; ignore_index / class weights are not supported.
    """
    n, c = logits.shape
    targets_col = targets.astype(jnp.int32).reshape(n, 1)

    # Tile size: multiple of 8 (f32 sublane), ~2 MiB of logits per tile, capped by N.
    itemsize = jnp.dtype(logits.dtype).itemsize
    bytes_per_row = max(c * itemsize, 1)
    tile_n = (2 * 1024 * 1024 // bytes_per_row) // 8 * 8
    tile_n = max(8, min(2048, tile_n))
    n_pad8 = ((n + 7) // 8) * 8
    tile_n = min(tile_n, n_pad8)

    n_pad = ((n + tile_n - 1) // tile_n) * tile_n
    if n_pad != n:
        logits = jnp.pad(logits, ((0, n_pad - n), (0, 0)))
        targets_col = jnp.pad(targets_col, ((0, n_pad - n), (0, 0)))
    num_tiles = n_pad // tile_n

    kernel = functools.partial(
        _focal_loss_kernel,
        alpha=float(alpha), gamma=float(gamma), tile_n=tile_n, n_valid=n)

    per_row = pl.pallas_call(
        kernel,
        out_shape=jax.ShapeDtypeStruct((n_pad, 1), jnp.float32),
        grid=(num_tiles,),
        in_specs=[
            pl.BlockSpec((tile_n, c), lambda i: (i, 0)),   # logits tile
            pl.BlockSpec((tile_n, 1), lambda i: (i, 0)),   # targets column tile
        ],
        out_specs=pl.BlockSpec((tile_n, 1), lambda i: (i, 0)),
        compiler_params=pltpu.CompilerParams(
            dimension_semantics=("parallel",),             # shard tiles across TCs (v7x)
            vmem_limit_bytes=32 * 1024 * 1024,
        ),
        cost_estimate=pl.CostEstimate(
            flops=6 * n_pad * c,
            transcendentals=n_pad * c + 3 * n_pad,
            bytes_accessed=n_pad * c * itemsize + 8 * n_pad,
        ),
    )(logits, targets_col)

    # Tiny final reduction (N floats) in plain JAX; padded rows contribute 0.
    return jnp.sum(per_row) / jnp.float32(n)


def _focal_loss_ref(logits, targets, alpha=0.5, gamma=1.5):
    # Pure-JAX reference mirroring F.cross_entropy(reduction='none') + focal weighting.
    logp = jax.nn.log_softmax(logits.astype(jnp.float32), axis=-1)
    ce = -jnp.take_along_axis(logp, targets[:, None].astype(jnp.int32), axis=-1)[:, 0]
    pt = jnp.exp(-ce)
    return jnp.mean(alpha * (1.0 - pt) ** gamma * ce)


if __name__ == "__main__":
    key = jax.random.PRNGKey(0)
    k1, k2, k3, k4 = jax.random.split(key, 4)

    # Small shapes consistent with a classification head.
    N, C = 8, 32
    logits = jax.random.normal(k1, (N, C), dtype=jnp.float32)
    targets = jax.random.randint(k2, (N,), 0, C, dtype=jnp.int32)

    out = jax.block_until_ready(focal_loss(logits, targets, alpha=0.5, gamma=1.5))
    ref = _focal_loss_ref(logits, targets, alpha=0.5, gamma=1.5)
    assert jnp.allclose(out, ref, atol=1e-5, rtol=1e-5), (out, ref)

    # Ragged batch (exercises padding + in-kernel row masking).
    N2, C2 = 10, 32
    logits2 = jax.random.normal(k3, (N2, C2), dtype=jnp.float32)
    targets2 = jax.random.randint(k4, (N2,), 0, C2, dtype=jnp.int32)

    out2 = jax.block_until_ready(focal_loss(logits2, targets2, alpha=0.5, gamma=1.5))
    ref2 = _focal_loss_ref(logits2, targets2, alpha=0.5, gamma=1.5)
    assert jnp.allclose(out2, ref2, atol=1e-5, rtol=1e-5), (out2, ref2)

    print("KERNEL_OK")
</pallas_src>

<mosaic_0001>
module attributes {stable_mosaic.version = 11 : i64} {
  func.func @_focal_loss_kernel(%arg0: i32, %arg1: memref<8x32xf32, #tpu.memory_space<vmem>>, %arg2: memref<8x1xi32, #tpu.memory_space<vmem>>, %arg3: memref<8x1xf32, #tpu.memory_space<vmem>>) attributes {dimension_semantics = [#tpu.dimension_semantics<parallel>], iteration_bounds = array<i64: 1>, scalar_prefetch = 0 : i64, scratch_operands = 0 : i64, tpu.core_type = #tpu.core_type<tc>, window_params = [{transform_indices = @transform_0, window_bounds = array<i64: 8, 32>}, {transform_indices = @transform_1, window_bounds = array<i64: 8, 1>}, {transform_indices = @transform_2, window_bounds = array<i64: 8, 1>}]} {
    %c0 = arith.constant 0 : index
    %c0_0 = arith.constant 0 : index
    %0 = vector.load %arg1[%c0, %c0_0] : memref<8x32xf32, #tpu.memory_space<vmem>>, vector<8x32xf32>
    %c0_1 = arith.constant 0 : index
    %c0_2 = arith.constant 0 : index
    %1 = vector.load %arg2[%c0_1, %c0_2] : memref<8x1xi32, #tpu.memory_space<vmem>>, vector<8x1xi32>
    %cst = arith.constant dense<0xFF800000> : vector<8xf32>
    %2 = vector.multi_reduction <maximumf>, %0, %cst [1] : vector<8x32xf32> to vector<8xf32>
    %3 = vector.shape_cast %2 : vector<8xf32> to vector<8x1xf32>
    %4 = vector.broadcast %3 : vector<8x1xf32> to vector<8x32xf32>
    %5 = arith.subf %0, %4 : vector<8x32xf32>
    %6 = math.exp %5 : vector<8x32xf32>
    %cst_3 = arith.constant dense<0.000000e+00> : vector<8xf32>
    %7 = vector.multi_reduction <add>, %6, %cst_3 [1] : vector<8x32xf32> to vector<8xf32>
    %8 = vector.shape_cast %7 : vector<8xf32> to vector<8x1xf32>
    %9 = tpu.iota {dimensions = array<i32: 1>} : vector<8x32xi32>
    %10 = vector.broadcast %1 : vector<8x1xi32> to vector<8x32xi32>
    %11 = arith.cmpi eq, %9, %10 : vector<8x32xi32>
    %cst_4 = arith.constant 0.000000e+00 : f32
    %12 = vector.broadcast %cst_4 : f32 to vector<8x32xf32>
    %13 = arith.select %11, %5, %12 : vector<8x32xi1>, vector<8x32xf32>
    %cst_5 = arith.constant dense<0.000000e+00> : vector<8xf32>
    %14 = vector.multi_reduction <add>, %13, %cst_5 [1] : vector<8x32xf32> to vector<8xf32>
    %15 = vector.shape_cast %14 : vector<8xf32> to vector<8x1xf32>
    %16 = math.log %8 : vector<8x1xf32>
    %17 = arith.subf %16, %15 : vector<8x1xf32>
    %cst_6 = arith.constant 0.000000e+00 : f32
    %18 = vector.broadcast %cst_6 : f32 to vector<8x1xf32>
    %19 = arith.subf %18, %17 : vector<8x1xf32>
    %20 = math.exp %19 : vector<8x1xf32>
    %cst_7 = arith.constant 1.000000e+00 : f32
    %21 = vector.broadcast %cst_7 : f32 to vector<8x1xf32>
    %22 = arith.subf %21, %20 : vector<8x1xf32>
    %cst_8 = arith.constant 0.000000e+00 : f32
    %23 = vector.broadcast %cst_8 : f32 to vector<8x1xf32>
    %24 = arith.maximumf %22, %23 : vector<8x1xf32>
    %25 = math.sqrt %24 : vector<8x1xf32>
    %26 = arith.mulf %24, %25 : vector<8x1xf32>
    %cst_9 = arith.constant 5.000000e-01 : f32
    %27 = vector.broadcast %cst_9 : f32 to vector<8x1xf32>
    %28 = arith.mulf %27, %26 : vector<8x1xf32>
    %29 = arith.mulf %28, %17 : vector<8x1xf32>
    %c8_i32 = arith.constant 8 : i32
    %30 = arith.muli %arg0, %c8_i32 : i32
    %31 = tpu.iota {dimensions = array<i32: 0>} : vector<8x1xi32>
    %32 = vector.broadcast %30 : i32 to vector<8x1xi32>
    %33 = arith.addi %32, %31 : vector<8x1xi32>
    %c8_i32_10 = arith.constant 8 : i32
    %34 = vector.broadcast %c8_i32_10 : i32 to vector<8x1xi32>
    %35 = arith.cmpi slt, %33, %34 : vector<8x1xi32>
    %cst_11 = arith.constant 0.000000e+00 : f32
    %36 = vector.broadcast %cst_11 : f32 to vector<8x1xf32>
    %37 = arith.select %35, %29, %36 : vector<8x1xi1>, vector<8x1xf32>
    %c0_12 = arith.constant 0 : index
    %c0_13 = arith.constant 0 : index
    %38 = vector.load %arg3[%c0_12, %c0_13] : memref<8x1xf32, #tpu.memory_space<vmem>>, vector<8x1xf32>
    tpu.vector_store %arg3[%c0_12, %c0_13], %37 {strides = array<i32>} : memref<8x1xf32, #tpu.memory_space<vmem>>, vector<8x1xf32>,
    return
  }
  func.func @transform_0(%arg0: i32) -> (i32, i32) {
    %c0_i32 = arith.constant 0 : i32
    %c0_i32_0 = arith.constant 0 : i32
    return %arg0, %c0_i32 : i32, i32
  }
  func.func @transform_1(%arg0: i32) -> (i32, i32) {
    %c0_i32 = arith.constant 0 : i32
    %c0_i32_0 = arith.constant 0 : i32
    return %arg0, %c0_i32 : i32, i32
  }
  func.func @transform_2(%arg0: i32) -> (i32, i32) {
    %c0_i32 = arith.constant 0 : i32
    %c0_i32_0 = arith.constant 0 : i32
    return %arg0, %c0_i32 : i32, i32
  }
}

</mosaic_0001>

<bundles_post_ra>
// kernel: tpu_custom_call.1
= control target key start
LH: loop header
LB: loop body
LE: loop exit
PB: predicated region body
PF: predicated region fallthrough
CT: control target
= control target key end

     0   :  { %vm13_vm0 = vcmask 261120   ;;  %v74_v1 = vmov 0   ;;  %v23_v7 = vlaneseq  ;;  %vm58_vm4 = vcmask 7168   ;;  %s102_s0 = inlined_call_operand.vmem [shape: f32[8,32], index: 0, kind: input, shape index: {}]   ;;  %s103_s1 = inlined_call_operand.vmem [shape: s32[8,1], index: 1, kind: input, shape index: {}]   ;;  %s104_s2 = inlined_call_operand.vmem [shape: f32[8,1], index: 2, kind: output, shape index: {}]  }
   0x1   :  { %v11_v0 = vld [vmem:[%s102_s0] sm:$0xff]  ;;  %65 = vset.pattern.permute.xlu0 %v74_v1 }
   0x2   :  { %v14_v2 = vsel %vm13_vm0, %v11_v0, -inf  ;;  %v12_v3 = vld [vmem:[%s103_s1] sm:$0xff]  ;;  %v24_v8 = vand.u32 127, %v23_v7 }
   0x3   :  { %15 = vmax.xlane.f32.xlu0 %v14_v2 }
  0x19   :  { %26 = vperm.xlu0 %65, %v12_v3  }
  0x90   :  { %v16_v4 = vpop.xlane.xlu0 %15 }
  0x91   :  { %v17_v5 = vsub.f32 %v11_v0, %v16_v4 }
  0x93   :  { %v18_v6 = vmul.f32 1.442695, %v17_v5 }
  0x95   :  { %66 = vpow2.f32 %v18_v6 }
  0x98   :  { %v27_v9 = vpop.permute.xlu0 %26 }
  0x99   :  { %vm28_vm1 = vcmp.eq.s32.totalorder %v24_v8, %v27_v9 }
  0x9a   :  { %v29_v12 = vsel %vm28_vm1, %v17_v5, 0.0 }
  0x9b   :  { %v30_v13 = vsel %vm13_vm0, %v29_v12, 0.0 }
  0x9f   :  { %v67_v10 = vpop.eup %66 }
  0xa0   :  { %v20_v11 = vsel %vm13_vm0, %v67_v10, 0.0 }
  0xa1   :  { %21 = vadd.xlane.f32.xlu1 %v20_v11 }
  0xa5   :  { %31 = vadd.xlane.f32.xlu1 %v30_v13 }
 0x12e   :  { %v22_v14 = vpop.xlane.xlu1 %21 }
 0x12f   :  { %68 = vlog2.f32 %v22_v14 }
 0x132   :  { %v32_v17 = vpop.xlane.xlu1 %31 }
 0x139   :  { %v69_v15 = vpop.eup %68 }
 0x13a   :  { %v34_v16 = vmul.f32 0.6931472, %v69_v15 }
 0x13c   :  { %v35_v18 = vsub.f32 %v34_v16, %v32_v17 }
 0x13e   :  { %v36_v19 = vsub.f32 0.0, %v35_v18 }
 0x140   :  { %v37_v20 = vmul.f32 1.442695, %v36_v19 }
 0x142   :  { %70 = vpow2.f32 %v37_v20 }
 0x14c   :  { %v71_v21 = vpop.eup %70 }
 0x14d   :  { %v39_v22 = vsub.f32 1.0, %v71_v21 }
 0x14f   :  { %v40_v23 = vmax.f32 %v39_v22, 0.0 }
 0x151   :  { %72 = vrsqrt.f32 %v40_v23  ;;  %vm43_vm2 = vcmp.eq.f32.partialorder %v40_v23, inf  ;;  %v46_v26 = vand.u32 2147483648, %v40_v23  ;;  %vm45_vm3 = vcmp.eq.f32.partialorder %v40_v23, 0.0 }
 0x15b   :  { %v73_v24 = vpop.eup %72 }
 0x15c   :  { %v42_v25 = vmul.f32 %v73_v24, %v40_v23 }
 0x15e   :  { %v44_v27 = vsel %vm43_vm2, %v40_v23, %v42_v25 }
 0x15f   :  { %v47_v28 = vsel %vm45_vm3, %v46_v26, %v44_v27 }
 0x160   :  { %v48_v29 = vmul.f32 %v47_v28, %v40_v23 }
 0x162   :  { %v49_v30 = vmul.f32 0.5, %v48_v29 }
 0x164   :  { %v50_v31 = vmul.f32 %v49_v30, %v35_v18 }
 0x166   :  { %59 = vst.msk [vmem:[%s104_s2] sm:$0xff] %vm58_vm4, %v50_v31 }

</bundles_post_ra>
